<compile_context>
chip_gen: v7x
topology: tpu7x:2x2x1
jax: 0.10.0
libtpu: 0.0.40
codegen_flags: <defaults>
</compile_context>

<pallas_src>
import functools

import jax
import jax.numpy as jnp
from jax.experimental import pallas as pl
from jax.experimental.pallas import tpu as pltpu


def _round_up(v, m):
    return ((v + m - 1) // m) * m


def _gaussian_kernel(x_ref, o_ref, *, scale):
    # x_ref / o_ref: (TR, LN) float32 tiles.  scale = -1/(2*w*w).
    xv = x_ref[...]
    o_ref[...] = jnp.exp((xv * xv) * scale)


def integration_inf_forward(x, w, *, row_tile=512, lane_width=1024):
    """Elementwise exp(-x*x / (2*w*w)) for an arbitrarily shaped x."""
    x = jnp.asarray(x, jnp.float32)
    orig_shape = x.shape
    scale = -1.0 / (2.0 * float(w) * float(w))

    # ---- Lay the data out as a lane-dense, fully padded 2-D slab ---------
    flat = x.reshape(-1)
    m = flat.shape[0]
    # Lane (last) dim: multiple of 128, capped at `lane_width`.
    ln = lane_width if m >= lane_width else max(128, _round_up(m, 128))
    rows = -(-m // ln)                                   # cdiv
    # Row tile: multiple of 8, capped at `row_tile`; pad rows to a multiple
    # of the tile so no grid step ever sees a ragged block (no masked vst).
    tr = row_tile if rows >= row_tile else _round_up(rows, 8)
    rows_p = _round_up(rows, tr)
    padded = rows_p * ln
    flat_p = jnp.pad(flat, (0, padded - m)) if padded != m else flat
    x2 = flat_p.reshape(rows_p, ln)

    # ---- Tiled, pipelined launch ------------------------------------------
    grid = (rows_p // tr,)
    out2 = pl.pallas_call(
        functools.partial(_gaussian_kernel, scale=scale),
        out_shape=jax.ShapeDtypeStruct((rows_p, ln), jnp.float32),
        grid=grid,
        in_specs=[pl.BlockSpec((tr, ln), lambda i: (i, 0))],
        out_specs=pl.BlockSpec((tr, ln), lambda i: (i, 0)),
        compiler_params=pltpu.CompilerParams(
            dimension_semantics=("parallel",),
        ),
    )(x2)

    # Drop padding and restore the caller's shape.
    return out2.reshape(-1)[:m].reshape(orig_shape)


class IntegrationInfModule:
    """Mirror of the torch module: w fixed at __init__, forward is elementwise."""

    def __init__(self, w):
        self.w = w

    def __call__(self, x):
        return integration_inf_forward(x, self.w)


if __name__ == "__main__":
    key = jax.random.PRNGKey(0)
    k1, k2 = jax.random.split(key)

    w = 1.5
    module = IntegrationInfModule(w)

    # Small demo input (integration points); arbitrary shape is supported.
    x_small = jax.random.normal(k1, (4, 1000), dtype=jnp.float32) * 3.0
    y_small = module(x_small)
    jax.block_until_ready(y_small)
    ref_small = jnp.exp(-x_small * x_small / (2.0 * w * w))
    assert y_small.shape == x_small.shape
    assert jnp.allclose(y_small, ref_small, atol=1e-5)

    # Second call with tiny tiles to exercise a multi-step pipelined grid
    # (and the ragged-edge padding path) while keeping the data small.
    x_multi = jax.random.normal(k2, (40, 300), dtype=jnp.float32) * 3.0
    y_multi = integration_inf_forward(x_multi, w, row_tile=8, lane_width=256)
    jax.block_until_ready(y_multi)
    ref_multi = jnp.exp(-x_multi * x_multi / (2.0 * w * w))
    assert y_multi.shape == x_multi.shape
    assert jnp.allclose(y_multi, ref_multi, atol=1e-5)

    print("KERNEL_OK")
</pallas_src>

<mosaic_0001>
module attributes {stable_mosaic.version = 11 : i64} {
  func.func @_gaussian_kernel(%arg0: i32, %arg1: memref<8x1024xf32, #tpu.memory_space<vmem>>, %arg2: memref<8x1024xf32, #tpu.memory_space<vmem>>) attributes {dimension_semantics = [#tpu.dimension_semantics<parallel>], iteration_bounds = array<i64: 1>, scalar_prefetch = 0 : i64, scratch_operands = 0 : i64, tpu.core_type = #tpu.core_type<tc>, window_params = [{transform_indices = @transform_0, window_bounds = array<i64: 8, 1024>}, {transform_indices = @transform_1, window_bounds = array<i64: 8, 1024>}]} {
    %c0 = arith.constant 0 : index
    %c0_0 = arith.constant 0 : index
    %0 = vector.load %arg1[%c0, %c0_0] : memref<8x1024xf32, #tpu.memory_space<vmem>>, vector<8x1024xf32>
    %1 = arith.mulf %0, %0 : vector<8x1024xf32>
    %cst = arith.constant -0.222222224 : f32
    %2 = vector.broadcast %cst : f32 to vector<8x1024xf32>
    %3 = arith.mulf %1, %2 : vector<8x1024xf32>
    %4 = math.exp %3 : vector<8x1024xf32>
    %c0_1 = arith.constant 0 : index
    %c0_2 = arith.constant 0 : index
    %5 = vector.load %arg2[%c0_1, %c0_2] : memref<8x1024xf32, #tpu.memory_space<vmem>>, vector<8x1024xf32>
    tpu.vector_store %arg2[%c0_1, %c0_2], %4 {strides = array<i32>} : memref<8x1024xf32, #tpu.memory_space<vmem>>, vector<8x1024xf32>,
    return
  }
  func.func @transform_0(%arg0: i32) -> (i32, i32) {
    %c0_i32 = arith.constant 0 : i32
    %c0_i32_0 = arith.constant 0 : i32
    return %arg0, %c0_i32 : i32, i32
  }
  func.func @transform_1(%arg0: i32) -> (i32, i32) {
    %c0_i32 = arith.constant 0 : i32
    %c0_i32_0 = arith.constant 0 : i32
    return %arg0, %c0_i32 : i32, i32
  }
}

</mosaic_0001>

<bundles_post_ra>
// kernel: tpu_custom_call.1
= control target key start
LH: loop header
LB: loop body
LE: loop exit
PB: predicated region body
PF: predicated region fallthrough
CT: control target
= control target key end

     0   :  { %6 = vsyncpa [#allocation3], 0  ;;  %s186_s0 = inlined_call_operand.hbm [shape: f32[8,1024], index: 0, kind: input, shape index: {}]   ;;  %s187_s1 = inlined_call_operand.hbm [shape: f32[8,1024], index: 1, kind: output, shape index: {}]  }
   0x1   :  { %7 = vsyncpa [#allocation4], 0  ;;  %s150_s6 = smov [#allocation2]   ;;  %s102_s10 = scalar_lea.hbm %s186_s0, 1024 }
   0x2   :  { %s14_s7 = sshll.u32 %s150_s6, 4  ;;  %p103_p0 = scmp.ne.s32.totalorder %s186_s0, %s102_s10  ;;  %s15_s7 = int_to_ptr.vmem [resolvable:$true] %s14_s7 }
   0x3   :  { %p106_p1 = scmp.lt.u32.totalorder %s102_s10, %s186_s0 }
   0x5   :  { %p108_p2 = pnand %p106_p1, %p103_p0 }
   0x7   :  { %111 = shalt.err (!%p108_p2)
}
   0x8   :  { %s112_s15 = scalar_lea.vmem %s15_s7, 1024  ;;  %p117_p4 = scmp.lt.s32.totalorder %s15_s7, %s15_s7 }
   0x9   :  { %p113_p3 = scmp.ne.s32.totalorder %s15_s7, %s112_s15  ;;  %p118_p5 = scmp.lt.s32.totalorder %s112_s15, %s112_s15 }
   0xb   :  { %p119_p6 = por %p118_p5, %p117_p4 }
   0xd   :  { %p120_p7 = pnand %p119_p6, %p113_p3 }
   0xf   :  { %123 = shalt.err (!%p120_p7)
}
  0x10   :  { %17 = dma.hbm_to_vmem [thread:$0]  %s186_s0, 1024, %s15_s7, [#allocation3]  }
  0x11   :  { %146 = dma.done.wait [#allocation3], 1024  }
  0x12   :  { %147 = vsyncadd [#allocation3], 4294966272  ;;  %v21_v0 = vld [vmem:[#allocation2] sm:$0xff]  ;;  %v22_v1 = vld [vmem:[#allocation2 + $0x8] sm:$0xff]  ;;  %s151_s0 = smov [#allocation5]  }
  0x13   :  { %v23_v2 = vld [vmem:[#allocation2 + $0x10] sm:$0xff]  ;;  %v29_v3 = vmul.f32 %v21_v0, %v21_v0  ;;  %v30_v4 = vmul.f32 %v22_v1, %v22_v1  ;;  %v24_v6 = vld [vmem:[#allocation2 + $0x18] sm:$0xff]  ;;  %v25_v7 = vld [vmem:[#allocation2 + $0x20] sm:$0xff]  ;;  %s75_s18 = sshll.u32 %s151_s0, 4  ;;  %s76_s18 = int_to_ptr.vmem [resolvable:$true] %s75_s18 }
  0x14   :  { %v31_v5 = vmul.f32 %v23_v2, %v23_v2  ;;  %v26_v8 = vld [vmem:[#allocation2 + $0x28] sm:$0xff]  ;;  %v32_v9 = vmul.f32 %v24_v6, %v24_v6  ;;  %v33_v10 = vmul.f32 %v25_v7, %v25_v7  ;;  %v27_v12 = vld [vmem:[#allocation2 + $0x30] sm:$0xff]  ;;  %v28_v13 = vld [vmem:[#allocation2 + $0x38] sm:$0xff]  ;;  %s124_s19 = scalar_lea.vmem %s76_s18, 1024  ;;  %p129_p9 = scmp.lt.s32.totalorder %s76_s18, %s76_s18 }
  0x15   :  { %v34_v11 = vmul.f32 %v26_v8, %v26_v8  ;;  %v37_v14 = vmul.f32 -0.22222222, %v29_v3  ;;  %v38_v15 = vmul.f32 -0.22222222, %v30_v4  ;;  %v35_v17 = vmul.f32 %v27_v12, %v27_v12  ;;  %p125_p8 = scmp.ne.s32.totalorder %s76_s18, %s124_s19  ;;  %p130_p10 = scmp.lt.s32.totalorder %s124_s19, %s124_s19 }
  0x16   :  { %v39_v16 = vmul.f32 -0.22222222, %v31_v5  ;;  %v40_v18 = vmul.f32 -0.22222222, %v32_v9  ;;  %v41_v19 = vmul.f32 -0.22222222, %v33_v10  ;;  %v36_v21 = vmul.f32 %v28_v13, %v28_v13 }
  0x17   :  { %v42_v20 = vmul.f32 -0.22222222, %v34_v11  ;;  %v45_v22 = vmul.f32 1.442695, %v37_v14  ;;  %v47_v23 = vmul.f32 1.442695, %v38_v15  ;;  %p131_p11 = por %p130_p10, %p129_p9 }
  0x18   :  { %v49_v24 = vmul.f32 1.442695, %v39_v16  ;;  %v51_v25 = vmul.f32 1.442695, %v40_v18  ;;  %v53_v26 = vmul.f32 1.442695, %v41_v19 }
  0x19   :  { %86 = vpow2.f32 %v45_v22  ;;  %v43_v27 = vmul.f32 -0.22222222, %v35_v17  ;;  %v44_v28 = vmul.f32 -0.22222222, %v36_v21  ;;  %v55_v29 = vmul.f32 1.442695, %v42_v20  ;;  %p132_p12 = pnand %p131_p11, %p125_p8 }
  0x1a   :  { %88 = vpow2.f32 %v47_v23 }
  0x1b   :  { %90 = vpow2.f32 %v49_v24  ;;  %v57_v30 = vmul.f32 1.442695, %v43_v27  ;;  %v59_v31 = vmul.f32 1.442695, %v44_v28 }
  0x1c   :  { %92 = vpow2.f32 %v51_v25 }
  0x1d   :  { %94 = vpow2.f32 %v53_v26 }
  0x1e   :  { %96 = vpow2.f32 %v55_v29 }
  0x1f   :  { %98 = vpow2.f32 %v57_v30 }
  0x20   :  { %100 = vpow2.f32 %v59_v31 }
  0x23   :  { %v87_v32 = vpop.eup %86 }
  0x24   :  { %v89_v33 = vpop.eup %88  ;;  %61 = vst [vmem:[#allocation5] sm:$0xff] %v87_v32 }
  0x25   :  { %v91_v34 = vpop.eup %90  ;;  %62 = vst [vmem:[#allocation5 + $0x8] sm:$0xff] %v89_v33 }
  0x26   :  { %v93_v35 = vpop.eup %92  ;;  %63 = vst [vmem:[#allocation5 + $0x10] sm:$0xff] %v91_v34 }
  0x27   :  { %v95_v36 = vpop.eup %94  ;;  %64 = vst [vmem:[#allocation5 + $0x18] sm:$0xff] %v93_v35 }
  0x28   :  { %v97_v37 = vpop.eup %96  ;;  %65 = vst [vmem:[#allocation5 + $0x20] sm:$0xff] %v95_v36 }
  0x29   :  { %v99_v38 = vpop.eup %98  ;;  %66 = vst [vmem:[#allocation5 + $0x28] sm:$0xff] %v97_v37 }
  0x2a   :  { %v101_v39 = vpop.eup %100  ;;  %67 = vst [vmem:[#allocation5 + $0x30] sm:$0xff] %v99_v38 }
  0x2b   :  { %68 = vst [vmem:[#allocation5 + $0x38] sm:$0xff] %v101_v39 }
  0x2c   :  { %135 = shalt.err (!%p132_p12)
}
  0x2d   :  { %s136_s22 = scalar_lea.hbm %s187_s1, 1024 }
  0x2e   :  { %p137_p13 = scmp.ne.s32.totalorder %s187_s1, %s136_s22  ;;  %p140_p0 = scmp.lt.u32.totalorder %s136_s22, %s187_s1 }
  0x30   :  { %p142_p1 = pnand %p140_p0, %p137_p13 }
  0x32   :  { %145 = shalt.err (!%p142_p1)
}
  0x33   :  { %78 = dma.vmem_to_hbm [thread:$0]  %s76_s18, 1024, %s187_s1, [#allocation4]  }
  0x34   :  { %148 = dma.done.wait [#allocation4], 1024  }
  0x35   :  { %149 = vsyncadd [#allocation4], 4294966272 }
  0x36   :  { %82 = vsyncpa [#allocation3], 1 }
  0x37   :  { %83 = vsyncpa [#allocation4], 1 }

</bundles_post_ra>
